<compile_context>
chip_gen: v7x
topology: tpu7x:2x2x1
jax: 0.10.0
libtpu: 0.0.40
codegen_flags: <defaults>
</compile_context>

<pallas_src>
import functools
import math

import jax
import jax.numpy as jnp
from jax import lax
from jax.experimental import pallas as pl
from jax.experimental.pallas import tpu as pltpu

_NEG_INF = -1e9  # finite "masked" bias for padded kv columns (avoids inf-inf NaNs)


@functools.lru_cache(maxsize=1)
def _vmem_limit_bytes():
    """Generation-aware scoped-VMEM budget: ~3/4 of physical, capped at 100 MiB."""
    try:
        cap = int(getattr(pltpu.get_tpu_info(), "vmem_capacity_bytes"))
    except Exception:
        cap = 64 * 1024 * 1024  # conservative (v7x physical VMEM)
    return int(min(cap - cap // 4, 100 * 1024 * 1024))


def _compiler_params(dim_sem):
    return pltpu.CompilerParams(
        dimension_semantics=dim_sem,
        vmem_limit_bytes=_vmem_limit_bytes(),
    )


# ------------------------- fused q/k/v projection -----------------------------
def _qkv_proj_kernel(xq_ref, xk_ref, xv_ref, wq_ref, wk_ref, wv_ref,
                     bq_ref, bk_ref, bv_ref, q_ref, k_ref, v_ref):
    # x: (bm, D) f32, w: (D, D) bf16, b: (1, D) f32 -> out: (bm, D) bf16.
    cdt = wq_ref.dtype  # bf16 compute dtype for the MXU

    def proj(x_ref, w_ref, b_ref, o_ref):
        acc = jnp.dot(x_ref[...].astype(cdt), w_ref[...],
                      preferred_element_type=jnp.float32)
        o_ref[...] = (acc + b_ref[...]).astype(o_ref.dtype)

    proj(xq_ref, wq_ref, bq_ref, q_ref)
    proj(xk_ref, wk_ref, bk_ref, k_ref)
    proj(xv_ref, wv_ref, bv_ref, v_ref)


def pallas_qkv_proj(xq, xk, xv, wq, wk, wv, bq, bk, bv, *, block_m=512):
    """Three (M,D)@(D,D)+b projections fused into one pipelined pallas_call.

    xq/xk/xv: (M, D) f32 (no host-side stack of activations).
    wq/wk/wv: (D, D) bf16, bq/bk/bv: (1, D) f32.  Returns three (M, D) bf16.
    """
    M, D = xq.shape
    bm = min(block_m, M)
    pad = (-M) % bm
    if pad:
        padw = ((0, pad), (0, 0))
        xq = jnp.pad(xq, padw)
        xk = jnp.pad(xk, padw)
        xv = jnp.pad(xv, padw)
    Mp = M + pad

    x_spec = pl.BlockSpec((bm, D), lambda i: (i, 0))
    w_spec = pl.BlockSpec((D, D), lambda i: (0, 0))
    b_spec = pl.BlockSpec((1, D), lambda i: (0, 0))
    o_spec = pl.BlockSpec((bm, D), lambda i: (i, 0))
    out_dt = wq.dtype

    q, k, v = pl.pallas_call(
        _qkv_proj_kernel,
        out_shape=tuple(jax.ShapeDtypeStruct((Mp, D), out_dt) for _ in range(3)),
        grid=(Mp // bm,),
        in_specs=[x_spec, x_spec, x_spec, w_spec, w_spec, w_spec,
                  b_spec, b_spec, b_spec],
        out_specs=[o_spec, o_spec, o_spec],
        compiler_params=_compiler_params(("parallel",)),
    )(xq, xk, xv, wq, wk, wv, bq, bk, bv)

    if pad:
        q, k, v = q[:M], k[:M], v[:M]
    return q, k, v


# -------------------- flash attention + fused output projection ----------------
def _attn_kernel(q_ref, k_ref, v_ref, bias_ref, wo_ref, bo_ref, o_ref,
                 m_sc, l_sc, acc_sc, *, nhead):
    # q: (1, tq, D) bf16; k/v: (1, tk, D) bf16; bias: (tq, tk) f32;
    # wo: (D, D) bf16; bo: (1, D) f32; out: (1, tq, D) f32.
    ki = pl.program_id(2)
    nk = pl.num_programs(2)

    @pl.when(ki == 0)
    def _():
        m_sc[...] = jnp.full_like(m_sc, -jnp.inf)
        l_sc[...] = jnp.zeros_like(l_sc)
        acc_sc[...] = jnp.zeros_like(acc_sc)

    q = q_ref[0]            # (tq, D) bf16; 1/sqrt(Dh) already folded into wq/bq
    k = k_ref[0]            # (tk, D) bf16
    v = v_ref[0]            # (tk, D) bf16
    bias = bias_ref[...]    # (tq, tk) f32

    D = q.shape[-1]
    Dh = D // nhead
    dn = (((1,), (1,)), ((), ()))  # contract the Dh axes directly (no k.T copy)

    for h in range(nhead):  # static unroll; nhead is small
        sl = slice(h * Dh, (h + 1) * Dh)
        s = lax.dot_general(q[:, sl], k[:, sl], dn,
                            preferred_element_type=jnp.float32)   # (tq, tk) f32
        s = s + bias                                              # hyperedge bias
        m_prev = m_sc[h]                                          # (tq, 1)
        m_new = jnp.maximum(m_prev, jnp.max(s, axis=-1, keepdims=True))
        alpha = jnp.exp(m_prev - m_new)
        p = jnp.exp(s - m_new)                                    # f32 (v5e-safe)
        l_sc[h] = alpha * l_sc[h] + jnp.sum(p, axis=-1, keepdims=True)
        pv = jnp.dot(p.astype(v.dtype), v[:, sl],
                     preferred_element_type=jnp.float32)          # (tq, Dh)
        acc_sc[:, sl] = alpha * acc_sc[:, sl] + pv
        m_sc[h] = m_new

    @pl.when(ki == nk - 1)
    def _():
        # Normalize after PV (S*Dh multiplies instead of S*S), per-head scratch writes.
        for h in range(nhead):
            sl = slice(h * Dh, (h + 1) * Dh)
            inv = pl.reciprocal(l_sc[h], approx=True)             # EUP slot
            acc_sc[:, sl] = acc_sc[:, sl] * inv
        # Fused output projection: one lane-dense (tq, D) store, no HBM round trip.
        attn_out = acc_sc[...].astype(wo_ref.dtype)               # bf16
        proj = jnp.dot(attn_out, wo_ref[...],
                       preferred_element_type=jnp.float32) + bo_ref[...]
        o_ref[0] = proj.astype(o_ref.dtype)


def pallas_attention(q, k, v, bias, wo, bo, nhead, *, block_q=256, block_k=256):
    """Flash-style attention + fused out_proj.

    q/k/v: (B, S, D) bf16; bias: (S, S) f32; wo: (D, D) bf16; bo: (1, D) f32.
    Returns (B, S, D) f32 = out_proj(softmax(q k^T/sqrt(Dh) + bias) v).
    """
    B, S, D = q.shape
    tq = min(block_q, S)
    tk = min(block_k, S)
    pad_q = (-S) % tq
    pad_k = (-S) % tk
    if pad_q:
        q = jnp.pad(q, ((0, 0), (0, pad_q), (0, 0)))
    if pad_k:
        k = jnp.pad(k, ((0, 0), (0, pad_k), (0, 0)))
        v = jnp.pad(v, ((0, 0), (0, pad_k), (0, 0)))
    if pad_q:
        bias = jnp.pad(bias, ((0, pad_q), (0, 0)))
    if pad_k:  # mask padded kv columns so softmax ignores them
        bias = jnp.pad(bias, ((0, 0), (0, pad_k)), constant_values=_NEG_INF)
    Sq, Sk = S + pad_q, S + pad_k

    grid = (B, Sq // tq, Sk // tk)  # kv reduction axis last
    out = pl.pallas_call(
        functools.partial(_attn_kernel, nhead=nhead),
        out_shape=jax.ShapeDtypeStruct((B, Sq, D), jnp.float32),
        grid=grid,
        in_specs=[
            pl.BlockSpec((1, tq, D), lambda b, qi, ki: (b, qi, 0)),   # q
            pl.BlockSpec((1, tk, D), lambda b, qi, ki: (b, ki, 0)),   # k
            pl.BlockSpec((1, tk, D), lambda b, qi, ki: (b, ki, 0)),   # v
            pl.BlockSpec((tq, tk), lambda b, qi, ki: (qi, ki)),       # bias tile
            pl.BlockSpec((D, D), lambda b, qi, ki: (0, 0)),           # wo
            pl.BlockSpec((1, D), lambda b, qi, ki: (0, 0)),           # bo
        ],
        out_specs=pl.BlockSpec((1, tq, D), lambda b, qi, ki: (b, qi, 0)),
        scratch_shapes=[
            pltpu.VMEM((nhead, tq, 1), jnp.float32),   # running max m
            pltpu.VMEM((nhead, tq, 1), jnp.float32),   # running sum l
            pltpu.VMEM((tq, D), jnp.float32),          # unnormalized acc (all heads)
        ],
        compiler_params=_compiler_params(("parallel", "parallel", "arbitrary")),
    )(q, k, v, bias, wo, bo)
    return out[:, :S] if pad_q else out


# ------------------------------ module glue ------------------------------------
def init_params(key, d_model, hyperedge_size):
    """Deterministic init mirroring the nn.Linear shapes in __init__.
    Weights stored transposed relative to PyTorch, i.e. (in, out): y = x @ W + b."""
    ks = jax.random.split(key, 10)

    def lin(kw, kb, fan_in, fan_out):
        bound = 1.0 / math.sqrt(fan_in)
        w = jax.random.uniform(kw, (fan_in, fan_out), jnp.float32, -bound, bound)
        b = jax.random.uniform(kb, (fan_out,), jnp.float32, -bound, bound)
        return w, b

    params = {}
    params["wq"], params["bq"] = lin(ks[0], ks[1], d_model, d_model)
    params["wk"], params["bk"] = lin(ks[2], ks[3], d_model, d_model)
    params["wv"], params["bv"] = lin(ks[4], ks[5], d_model, d_model)
    # hyperedge_proj exists in the PyTorch __init__ but is never used in forward.
    params["w_he"], params["b_he"] = lin(ks[6], ks[7], d_model * hyperedge_size, d_model)
    params["wo"], params["bo"] = lin(ks[8], ks[9], d_model, d_model)
    return params


def create_hyperedge_attention(key, seq_len, num_hyperedges, hyperedge_size):
    """JAX equivalent of _create_hyperedge_attention: per (hyperedge, target row)
    a mask with value 1/hyperedge_size at random source indices (duplicate picks
    collapse via assignment), summed over hyperedges and divided by
    num_hyperedges.  Identical for every batch/head slice, so an (S, S) bias is
    exact."""
    idx = jax.random.randint(key, (num_hyperedges, seq_len, hyperedge_size), 0, seq_len)
    onehot = jax.nn.one_hot(idx, seq_len, dtype=jnp.float32)      # (E, T, h, S)
    presence = jnp.max(onehot, axis=2)                            # (E, T, S)
    bias = jnp.sum(presence, axis=0) * (1.0 / hyperedge_size) / num_hyperedges
    return bias                                                   # (T, S)


def hypergraph_attention_forward(params, query, key_t, value, hyperedge_bias, nhead):
    """Forward pass with attention_mask=None, edge_weights=None, eval mode."""
    # TODO(synk): attention_mask / edge_weights paths not exercised (None defaults);
    #             dropout is identity in eval mode.
    B, S, D = query.shape
    Dh = D // nhead
    scale = 1.0 / math.sqrt(Dh)
    cdt = jnp.bfloat16

    # Fold the 1/sqrt(Dh) softmax scale into the q projection (one-time constant
    # fold on the weight/bias), cast weights to bf16 for the MXU.
    wq = (params["wq"] * scale).astype(cdt)
    bq = (params["bq"] * scale).reshape(1, D)
    wk = params["wk"].astype(cdt)
    bk = params["bk"].reshape(1, D)
    wv = params["wv"].astype(cdt)
    bv = params["bv"].reshape(1, D)
    wo = params["wo"].astype(cdt)
    bo = params["bo"].reshape(1, D)

    # Fused q/k/v projection (single launch, no host-side activation stack).
    q, k, v = pallas_qkv_proj(
        query.reshape(B * S, D), key_t.reshape(B * S, D), value.reshape(B * S, D),
        wq, wk, wv, bq, bk, bv)
    q = q.reshape(B, S, D)
    k = k.reshape(B, S, D)
    v = v.reshape(B, S, D)

    # Flash attention with hyperedge bias; output projection fused in epilogue.
    return pallas_attention(q, k, v, hyperedge_bias, wo, bo, nhead)


def _reference_forward(params, query, key_t, value, bias, nhead):
    """Pure-jnp f32 reference for a correctness spot-check."""
    B, S, D = query.shape
    Dh = D // nhead

    def lin(x, w, b):
        return x @ w + b

    def split(x):
        return x.reshape(B, S, nhead, Dh).transpose(0, 2, 1, 3)

    q = split(lin(query, params["wq"], params["bq"]))
    k = split(lin(key_t, params["wk"], params["bk"]))
    v = split(lin(value, params["wv"], params["bv"]))
    s = jnp.einsum("bhqd,bhkd->bhqk", q, k) / math.sqrt(Dh) + bias
    a = jax.nn.softmax(s, axis=-1)
    o = jnp.einsum("bhqk,bhkd->bhqd", a, v).transpose(0, 2, 1, 3).reshape(B, S, D)
    return lin(o, params["wo"], params["bo"])


# --------------------------------- main -----------------------------------------
if __name__ == "__main__":
    d_model = 32
    nhead = 4
    hyperedge_size = 3
    num_hyperedges = 64
    batch = 2
    seq = 8
    # TODO(synk): these demo shapes are below the (8,128) vreg tile; benchmark at
    #             D multiple of 128 and S multiple of 256 for meaningful numbers.

    root = jax.random.PRNGKey(0)
    k_param, k_q, k_k, k_v, k_he = jax.random.split(root, 5)

    params = init_params(k_param, d_model, hyperedge_size)

    query = jax.random.normal(k_q, (batch, seq, d_model), jnp.float32)
    key_t = jax.random.normal(k_k, (batch, seq, d_model), jnp.float32)
    value = jax.random.normal(k_v, (batch, seq, d_model), jnp.float32)

    hyperedge_bias = create_hyperedge_attention(k_he, seq, num_hyperedges, hyperedge_size)

    out = hypergraph_attention_forward(params, query, key_t, value, hyperedge_bias, nhead)
    out = jax.block_until_ready(out)

    assert out.shape == (batch, seq, d_model), out.shape
    assert bool(jnp.all(jnp.isfinite(out)))

    ref = _reference_forward(params, query, key_t, value, hyperedge_bias, nhead)
    err = float(jnp.max(jnp.abs(out - ref)))
    # Tolerance accounts for bf16 matmul operands + approx reciprocal vs f32 reference.
    assert err < 1e-1, f"max abs error vs reference too large: {err}"

    print("KERNEL_OK")
</pallas_src>

<mosaic_0001>
module attributes {stable_mosaic.version = 11 : i64} {
  func.func @_qkv_proj_kernel(%arg0: i32, %arg1: memref<16x32xf32, #tpu.memory_space<vmem>>, %arg2: memref<16x32xf32, #tpu.memory_space<vmem>>, %arg3: memref<16x32xf32, #tpu.memory_space<vmem>>, %arg4: memref<32x32xbf16, #tpu.memory_space<vmem>>, %arg5: memref<32x32xbf16, #tpu.memory_space<vmem>>, %arg6: memref<32x32xbf16, #tpu.memory_space<vmem>>, %arg7: memref<1x32xf32, #tpu.memory_space<vmem>>, %arg8: memref<1x32xf32, #tpu.memory_space<vmem>>, %arg9: memref<1x32xf32, #tpu.memory_space<vmem>>, %arg10: memref<16x32xbf16, #tpu.memory_space<vmem>>, %arg11: memref<16x32xbf16, #tpu.memory_space<vmem>>, %arg12: memref<16x32xbf16, #tpu.memory_space<vmem>>) attributes {dimension_semantics = [#tpu.dimension_semantics<parallel>], iteration_bounds = array<i64: 1>, scalar_prefetch = 0 : i64, scratch_operands = 0 : i64, tpu.core_type = #tpu.core_type<tc>, window_params = [{transform_indices = @transform_0, window_bounds = array<i64: 16, 32>}, {transform_indices = @transform_1, window_bounds = array<i64: 16, 32>}, {transform_indices = @transform_2, window_bounds = array<i64: 16, 32>}, {pipeline_mode = #tpu.pipeline_mode<synchronous>, transform_indices = @transform_3, window_bounds = array<i64: 32, 32>}, {pipeline_mode = #tpu.pipeline_mode<synchronous>, transform_indices = @transform_4, window_bounds = array<i64: 32, 32>}, {pipeline_mode = #tpu.pipeline_mode<synchronous>, transform_indices = @transform_5, window_bounds = array<i64: 32, 32>}, {pipeline_mode = #tpu.pipeline_mode<synchronous>, transform_indices = @transform_6, window_bounds = array<i64: 1, 32>}, {pipeline_mode = #tpu.pipeline_mode<synchronous>, transform_indices = @transform_7, window_bounds = array<i64: 1, 32>}, {pipeline_mode = #tpu.pipeline_mode<synchronous>, transform_indices = @transform_8, window_bounds = array<i64: 1, 32>}, {transform_indices = @transform_9, window_bounds = array<i64: 16, 32>}, {transform_indices = @transform_10, window_bounds = array<i64: 16, 32>}, {transform_indices = @transform_11, window_bounds = array<i64: 16, 32>}]} {
    %c0 = arith.constant 0 : index
    %c0_0 = arith.constant 0 : index
    %0 = vector.load %arg1[%c0, %c0_0] : memref<16x32xf32, #tpu.memory_space<vmem>>, vector<16x32xf32>
    %1 = arith.truncf %0 : vector<16x32xf32> to vector<16x32xbf16>
    %c0_1 = arith.constant 0 : index
    %c0_2 = arith.constant 0 : index
    %2 = vector.load %arg4[%c0_1, %c0_2] : memref<32x32xbf16, #tpu.memory_space<vmem>>, vector<32x32xbf16>
    %cst = arith.constant dense<0.000000e+00> : vector<16x32xf32>
    %3 = tpu.matmul %1, %2, %cst {dimension_numbers = #tpu.dot_dimension_numbers<[1], [0], [0], [1], [0, 0, 1, 1], [], []>} : vector<16x32xbf16>, vector<32x32xbf16>, vector<16x32xf32> -> vector<16x32xf32>
    %c0_3 = arith.constant 0 : index
    %c0_4 = arith.constant 0 : index
    %4 = vector.load %arg7[%c0_3, %c0_4] : memref<1x32xf32, #tpu.memory_space<vmem>>, vector<1x32xf32>
    %5 = vector.broadcast %4 : vector<1x32xf32> to vector<16x32xf32>
    %6 = arith.addf %3, %5 : vector<16x32xf32>
    %7 = arith.truncf %6 : vector<16x32xf32> to vector<16x32xbf16>
    %c0_5 = arith.constant 0 : index
    %c0_6 = arith.constant 0 : index
    %8 = vector.load %arg10[%c0_5, %c0_6] : memref<16x32xbf16, #tpu.memory_space<vmem>>, vector<16x32xbf16>
    tpu.vector_store %arg10[%c0_5, %c0_6], %7 {strides = array<i32>} : memref<16x32xbf16, #tpu.memory_space<vmem>>, vector<16x32xbf16>,
    %c0_7 = arith.constant 0 : index
    %c0_8 = arith.constant 0 : index
    %9 = vector.load %arg2[%c0_7, %c0_8] : memref<16x32xf32, #tpu.memory_space<vmem>>, vector<16x32xf32>
    %10 = arith.truncf %9 : vector<16x32xf32> to vector<16x32xbf16>
    %c0_9 = arith.constant 0 : index
    %c0_10 = arith.constant 0 : index
    %11 = vector.load %arg5[%c0_9, %c0_10] : memref<32x32xbf16, #tpu.memory_space<vmem>>, vector<32x32xbf16>
    %cst_11 = arith.constant dense<0.000000e+00> : vector<16x32xf32>
    %12 = tpu.matmul %10, %11, %cst_11 {dimension_numbers = #tpu.dot_dimension_numbers<[1], [0], [0], [1], [0, 0, 1, 1], [], []>} : vector<16x32xbf16>, vector<32x32xbf16>, vector<16x32xf32> -> vector<16x32xf32>
    %c0_12 = arith.constant 0 : index
    %c0_13 = arith.constant 0 : index
    %13 = vector.load %arg8[%c0_12, %c0_13] : memref<1x32xf32, #tpu.memory_space<vmem>>, vector<1x32xf32>
    %14 = vector.broadcast %13 : vector<1x32xf32> to vector<16x32xf32>
    %15 = arith.addf %12, %14 : vector<16x32xf32>
    %16 = arith.truncf %15 : vector<16x32xf32> to vector<16x32xbf16>
    %c0_14 = arith.constant 0 : index
    %c0_15 = arith.constant 0 : index
    %17 = vector.load %arg11[%c0_14, %c0_15] : memref<16x32xbf16, #tpu.memory_space<vmem>>, vector<16x32xbf16>
    tpu.vector_store %arg11[%c0_14, %c0_15], %16 {strides = array<i32>} : memref<16x32xbf16, #tpu.memory_space<vmem>>, vector<16x32xbf16>,
    %c0_16 = arith.constant 0 : index
    %c0_17 = arith.constant 0 : index
    %18 = vector.load %arg3[%c0_16, %c0_17] : memref<16x32xf32, #tpu.memory_space<vmem>>, vector<16x32xf32>
    %19 = arith.truncf %18 : vector<16x32xf32> to vector<16x32xbf16>
    %c0_18 = arith.constant 0 : index
    %c0_19 = arith.constant 0 : index
    %20 = vector.load %arg6[%c0_18, %c0_19] : memref<32x32xbf16, #tpu.memory_space<vmem>>, vector<32x32xbf16>
    %cst_20 = arith.constant dense<0.000000e+00> : vector<16x32xf32>
    %21 = tpu.matmul %19, %20, %cst_20 {dimension_numbers = #tpu.dot_dimension_numbers<[1], [0], [0], [1], [0, 0, 1, 1], [], []>} : vector<16x32xbf16>, vector<32x32xbf16>, vector<16x32xf32> -> vector<16x32xf32>
    %c0_21 = arith.constant 0 : index
    %c0_22 = arith.constant 0 : index
    %22 = vector.load %arg9[%c0_21, %c0_22] : memref<1x32xf32, #tpu.memory_space<vmem>>, vector<1x32xf32>
    %23 = vector.broadcast %22 : vector<1x32xf32> to vector<16x32xf32>
    %24 = arith.addf %21, %23 : vector<16x32xf32>
    %25 = arith.truncf %24 : vector<16x32xf32> to vector<16x32xbf16>
    %c0_23 = arith.constant 0 : index
    %c0_24 = arith.constant 0 : index
    %26 = vector.load %arg12[%c0_23, %c0_24] : memref<16x32xbf16, #tpu.memory_space<vmem>>, vector<16x32xbf16>
    tpu.vector_store %arg12[%c0_23, %c0_24], %25 {strides = array<i32>} : memref<16x32xbf16, #tpu.memory_space<vmem>>, vector<16x32xbf16>,
    return
  }
  func.func @transform_0(%arg0: i32) -> (i32, i32) {
    %c0_i32 = arith.constant 0 : i32
    %c0_i32_0 = arith.constant 0 : i32
    return %arg0, %c0_i32 : i32, i32
  }
  func.func @transform_1(%arg0: i32) -> (i32, i32) {
    %c0_i32 = arith.constant 0 : i32
    %c0_i32_0 = arith.constant 0 : i32
    return %arg0, %c0_i32 : i32, i32
  }
  func.func @transform_2(%arg0: i32) -> (i32, i32) {
    %c0_i32 = arith.constant 0 : i32
    %c0_i32_0 = arith.constant 0 : i32
    return %arg0, %c0_i32 : i32, i32
  }
  func.func @transform_3(%arg0: i32) -> (i32, i32) {
    %c0_i32 = arith.constant 0 : i32
    %c0_i32_0 = arith.constant 0 : i32
    %c0_i32_1 = arith.constant 0 : i32
    return %c0_i32, %c0_i32_0 : i32, i32
  }
  func.func @transform_4(%arg0: i32) -> (i32, i32) {
    %c0_i32 = arith.constant 0 : i32
    %c0_i32_0 = arith.constant 0 : i32
    %c0_i32_1 = arith.constant 0 : i32
    return %c0_i32, %c0_i32_0 : i32, i32
  }
  func.func @transform_5(%arg0: i32) -> (i32, i32) {
    %c0_i32 = arith.constant 0 : i32
    %c0_i32_0 = arith.constant 0 : i32
    %c0_i32_1 = arith.constant 0 : i32
    return %c0_i32, %c0_i32_0 : i32, i32
  }
  func.func @transform_6(%arg0: i32) -> (i32, i32) {
    %c0_i32 = arith.constant 0 : i32
    %c0_i32_0 = arith.constant 0 : i32
    %c0_i32_1 = arith.constant 0 : i32
    return %c0_i32, %c0_i32_0 : i32, i32
  }
  func.func @transform_7(%arg0: i32) -> (i32, i32) {
    %c0_i32 = arith.constant 0 : i32
    %c0_i32_0 = arith.constant 0 : i32
    %c0_i32_1 = arith.constant 0 : i32
    return %c0_i32, %c0_i32_0 : i32, i32
  }
  func.func @transform_8(%arg0: i32) -> (i32, i32) {
    %c0_i32 = arith.constant 0 : i32
    %c0_i32_0 = arith.constant 0 : i32
    %c0_i32_1 = arith.constant 0 : i32
    return %c0_i32, %c0_i32_0 : i32, i32
  }
  func.func @transform_9(%arg0: i32) -> (i32, i32) {
    %c0_i32 = arith.constant 0 : i32
    %c0_i32_0 = arith.constant 0 : i32
    return %arg0, %c0_i32 : i32, i32
  }
  func.func @transform_10(%arg0: i32) -> (i32, i32) {
    %c0_i32 = arith.constant 0 : i32
    %c0_i32_0 = arith.constant 0 : i32
    return %arg0, %c0_i32 : i32, i32
  }
  func.func @transform_11(%arg0: i32) -> (i32, i32) {
    %c0_i32 = arith.constant 0 : i32
    %c0_i32_0 = arith.constant 0 : i32
    return %arg0, %c0_i32 : i32, i32
  }
}

</mosaic_0001>

<bundles_post_ra>
// kernel: tpu_custom_call.1
= control target key start
LH: loop header
LB: loop body
LE: loop exit
PB: predicated region body
PF: predicated region fallthrough
CT: control target
= control target key end

     0   :  { %17 = vsyncpa [#allocation3], 0  ;;  %s900_s0 = inlined_call_operand.hbm [shape: f32[16,32], index: 0, kind: input, shape index: {}]   ;;  %s901_s1 = inlined_call_operand.hbm [shape: f32[16,32], index: 1, kind: input, shape index: {}]   ;;  %s902_s2 = inlined_call_operand.hbm [shape: f32[16,32], index: 2, kind: input, shape index: {}]   ;;  %s903_s3 = inlined_call_operand.hbm [shape: bf16[32,32], index: 3, kind: input, shape index: {}]   ;;  %s904_s4 = inlined_call_operand.hbm [shape: bf16[32,32], index: 4, kind: input, shape index: {}]   ;;  %s905_s5 = inlined_call_operand.vmem [shape: bf16[32,32], index: 5, kind: input, shape index: {}]   ;;  %s906_s6 = inlined_call_operand.vmem [shape: f32[1,32], index: 6, kind: input, shape index: {}]   ;;  %s907_s7 = inlined_call_operand.vmem [shape: f32[1,32], index: 7, kind: input, shape index: {}]   ;;  %s908_s8 = inlined_call_operand.vmem [shape: f32[1,32], index: 8, kind: input, shape index: {}]   ;;  %s909_s9 = inlined_call_operand.hbm [shape: bf16[16,32], index: 9, kind: output, shape index: {0}]   ;;  %s910_s10 = inlined_call_operand.hbm [shape: bf16[16,32], index: 10, kind: output, shape index: {1}]   ;;  %s911_s11 = inlined_call_operand.hbm [shape: bf16[16,32], index: 11, kind: output, shape index: {2}]  }
   0x1   :  { %18 = vsyncpa [#allocation6], 0 }
   0x2   :  { %19 = vsyncpa [#allocation9], 0 }
   0x3   :  { %20 = vsyncpa [#allocation4], 0 }
   0x4   :  { %21 = vsyncpa [#allocation13], 0  ;;  %s661_s17 = smov [#allocation5]   ;;  %s662_s19 = smov [#allocation8]  }
   0x5   :  { %s39_s18 = sshll.u32 %s661_s17, 4  ;;  %s63_s20 = sshll.u32 %s662_s19, 4  ;;  %s40_s18 = int_to_ptr.vmem [resolvable:$true] %s39_s18  ;;  %s735_s20 = int_to_ptr.vmem [resolvable:$true] %s63_s20 }
   0x6   :  { %s475_s23 = scalar_lea.hbm %s901_s1, 256 }
   0x7   :  { %p476_p0 = scmp.ne.s32.totalorder %s901_s1, %s475_s23  ;;  %p479_p1 = scmp.lt.u32.totalorder %s475_s23, %s901_s1 }
   0x9   :  { %p481_p2 = pnand %p479_p1, %p476_p0 }
   0xb   :  { %484 = shalt.err (!%p481_p2)
}
   0xc   :  { %s485_s28 = scalar_lea.vmem %s40_s18, 256  ;;  %p490_p4 = scmp.lt.s32.totalorder %s40_s18, %s40_s18 }
   0xd   :  { %p486_p3 = scmp.ne.s32.totalorder %s40_s18, %s485_s28  ;;  %p491_p5 = scmp.lt.s32.totalorder %s485_s28, %s485_s28 }
   0xf   :  { %p492_p6 = por %p491_p5, %p490_p4 }
  0x11   :  { %p493_p7 = pnand %p492_p6, %p486_p3 }
  0x13   :  { %496 = shalt.err (!%p493_p7)
}
  0x14   :  { %s663_s29 = smov 128   ;;  %s664_s30 = smov 8  }
  0x15   :  { %45 = dma.hbm_to_vmem [thread:$0]  %s901_s1, 256, %s40_s18, [#allocation6], %s663_s29, %s663_s29, %s664_s30  }
  0x16   :  { %s497_s16 = scalar_lea.hbm %s903_s3, 256 }
  0x17   :  { %p498_p8 = scmp.ne.s32.totalorder %s903_s3, %s497_s16  ;;  %p501_p9 = scmp.lt.u32.totalorder %s497_s16, %s903_s3 }
  0x19   :  { %p503_p10 = pnand %p501_p9, %p498_p8 }
  0x1b   :  { %506 = shalt.err (!%p503_p10)
}
  0x1c   :  { %s507_s23 = scalar_lea.vmem %s735_s20, 256  ;;  %p512_p12 = scmp.lt.s32.totalorder %s735_s20, %s735_s20 }
  0x1d   :  { %p508_p11 = scmp.ne.s32.totalorder %s735_s20, %s507_s23  ;;  %p513_p13 = scmp.lt.s32.totalorder %s507_s23, %s507_s23 }
  0x1f   :  { %p514_p0 = por %p513_p13, %p512_p12 }
  0x21   :  { %p515_p1 = pnand %p514_p0, %p508_p11 }
  0x23   :  { %518 = shalt.err (!%p515_p1)
}
  0x24   :  { %s665_s1 = smov 64   ;;  %s666_s18 = smov 4  }
  0x25   :  { %69 = dma.hbm_to_vmem [thread:$0]  %s903_s3, 256, %s735_s20, [#allocation9], %s665_s1, %s665_s1, %s666_s18  }
  0x26   :  { %s667_s26 = smov [#allocation2]   ;;  %s668_s28 = smov [#allocation7]  }
  0x27   :  { %s27_s27 = sshll.u32 %s667_s26, 4  ;;  %s51_s12 = sshll.u32 %s668_s28, 4  ;;  %s28_s27 = int_to_ptr.vmem [resolvable:$true] %s27_s27  ;;  %s772_s12 = int_to_ptr.vmem [resolvable:$true] %s51_s12 }
  0x28   :  { %s519_s15 = scalar_lea.hbm %s900_s0, 256 }
  0x29   :  { %p520_p2 = scmp.ne.s32.totalorder %s900_s0, %s519_s15  ;;  %p523_p3 = scmp.lt.u32.totalorder %s519_s15, %s900_s0 }
  0x2b   :  { %p525_p4 = pnand %p523_p3, %p520_p2 }
  0x2d   :  { %528 = shalt.err (!%p525_p4)
}
  0x2e   :  { %s529_s3 = scalar_lea.vmem %s28_s27, 256  ;;  %p534_p6 = scmp.lt.s32.totalorder %s28_s27, %s28_s27 }
  0x2f   :  { %p530_p5 = scmp.ne.s32.totalorder %s28_s27, %s529_s3  ;;  %p535_p7 = scmp.lt.s32.totalorder %s529_s3, %s529_s3 }
  0x31   :  { %p536_p8 = por %p535_p7, %p534_p6 }
  0x33   :  { %p537_p9 = pnand %p536_p8, %p530_p5 }
  0x35   :  { %540 = shalt.err (!%p537_p9)
}
  0x36   :  { %33 = dma.hbm_to_vmem [thread:$0]  %s900_s0, 256, %s28_s27, [#allocation3], %s663_s29, %s663_s29, %s664_s30  }
  0x37   :  { %s541_s25 = scalar_lea.hbm %s902_s2, 256 }
  0x38   :  { %p542_p10 = scmp.ne.s32.totalorder %s902_s2, %s541_s25  ;;  %p545_p11 = scmp.lt.u32.totalorder %s541_s25, %s902_s2 }
  0x3a   :  { %p547_p12 = pnand %p545_p11, %p542_p10 }
  0x3c   :  { %550 = shalt.err (!%p547_p12)
}
  0x3d   :  { %s551_s15 = scalar_lea.vmem %s772_s12, 256  ;;  %p556_p0 = scmp.lt.s32.totalorder %s772_s12, %s772_s12 }
  0x3e   :  { %p552_p13 = scmp.ne.s32.totalorder %s772_s12, %s551_s15  ;;  %p557_p1 = scmp.lt.s32.totalorder %s551_s15, %s551_s15 }
  0x40   :  { %p558_p2 = por %p557_p1, %p556_p0 }
  0x42   :  { %p559_p3 = pnand %p558_p2, %p552_p13 }
  0x44   :  { %562 = shalt.err (!%p559_p3)
}
  0x45   :  { %57 = dma.hbm_to_vmem [thread:$0]  %s902_s2, 256, %s772_s12, [#allocation6], %s663_s29, %s663_s29, %s664_s30  }
  0x46   :  { %s669_s16 = smov [#allocation10]   ;;  %s563_s3 = scalar_lea.hbm %s904_s4, 256 }
  0x47   :  { %s75_s17 = sshll.u32 %s669_s16, 4  ;;  %p564_p4 = scmp.ne.s32.totalorder %s904_s4, %s563_s3  ;;  %s76_s17 = int_to_ptr.vmem [resolvable:$true] %s75_s17 }
  0x48   :  { %p567_p5 = scmp.lt.u32.totalorder %s563_s3, %s904_s4 }
  0x4a   :  { %p569_p6 = pnand %p567_p5, %p564_p4 }
  0x4c   :  { %572 = shalt.err (!%p569_p6)
}
  0x4d   :  { %s573_s25 = scalar_lea.vmem %s76_s17, 256  ;;  %p578_p8 = scmp.lt.s32.totalorder %s76_s17, %s76_s17 }
  0x4e   :  { %p574_p7 = scmp.ne.s32.totalorder %s76_s17, %s573_s25  ;;  %p579_p9 = scmp.lt.s32.totalorder %s573_s25, %s573_s25 }
  0x50   :  { %p580_p10 = por %p579_p9, %p578_p8 }
  0x52   :  { %p581_p11 = pnand %p580_p10, %p574_p7 }
  0x54   :  { %584 = shalt.err (!%p581_p11)
}
  0x55   :  { %81 = dma.hbm_to_vmem [thread:$0]  %s904_s4, 256, %s76_s17, [#allocation9], %s665_s1, %s665_s1, %s666_s18  }
  0x56   :  { %651 = dma.done.wait [#allocation3], 256  }
  0x57   :  { %652 = vsyncadd [#allocation3], 4294967040 }
  0x58   :  { %653 = dma.done.wait [#allocation6], 512  }
  0x59   :  { %654 = vsyncadd [#allocation6], 4294966784 }
  0x5a   :  { %655 = dma.done.wait [#allocation9], 512  }
  0x5b   :  { %656 = vsyncadd [#allocation9], 4294966784  ;;  %v670_v0 = vmov 0.0   ;;  %vm671_vm0 = vmmov 0   ;;  %v469_v1 = vld [vmem:[#allocation8] sm:$0xff]   ;;  %v470_v2 = vld [vmem:[#allocation8 + $0x8] sm:$0xff]  }
  0x5c   :  { %431 = vmatprep.subr.bf16.mxu0 %v670_v0  ;;  %439 = vmatprep.subr.bf16.mxu1 %v670_v0  ;;  %v471_v3 = vld [vmem:[#allocation10] sm:$0xff]   ;;  %v107_v5 = vld [vmem:[#allocation2 + $0x8] sm:$0xff]  ;;  %v188_v9 = vld [vmem:[#allocation5] sm:$0xff]  ;;  %vm132_vm1 = vcmask 261120   ;;  %vm185_vm2 = vcmask 257024   ;;  %s673_s27 = smov [#allocation12]  }
  0x5d   :  { %435 = vmatprep.mubr.msk.bf16.mxu0 %vm671_vm0, %v670_v0  ;;  %443 = vmatprep.mubr.msk.bf16.mxu1 %vm671_vm0, %v670_v0  ;;  %v106_v4 = vld [vmem:[#allocation2] sm:$0xff]  ;;  %v473_v8 = vld [vmem:[#allocation10 + $0x8] sm:$0xff]   ;;  %v189_v10 = vld [vmem:[#allocation5 + $0x8] sm:$0xff] }
  0x5e   :  { %432 = vmatpush3.bf16.msra.mxu0 %v469_v1  ;;  %440 = vmatpush3.bf16.msra.mxu1 %v471_v3  ;;  %v472_v6 = vld [vmem:[%s905_s5] sm:$0xff]   ;;  %v108_v7 = vpack.c.bf16 %v107_v5, %v106_v4  ;;  %v190_v11 = vpack.c.bf16 %v189_v10, %v188_v9  ;;  %v474_v12 = vld [vmem:[%s905_s5 + $0x8] sm:$0xff]   ;;  %s672_s5 = smov [#allocation11]  }
  0x5f   :  { %433 = vmatprep.subr.bf16.mxu0 %v670_v0  ;;  %441 = vmatprep.subr.bf16.mxu1 %v670_v0  ;;  %v268_v13 = vld [vmem:[#allocation7] sm:$0xff]  ;;  %v269_v14 = vld [vmem:[#allocation7 + $0x8] sm:$0xff]  ;;  %s353_s0 = sshll.u32 %s672_s5, 4  ;;  %s354_s0 = int_to_ptr.vmem [resolvable:$true] %s353_s0 }
  0x60   :  { %v270_v15 = vpack.c.bf16 %v269_v14, %v268_v13  ;;  %v398_v16 = vld [vmem:[%s906_s6] ss:$0 sm:$0xff]  ;;  %s365_s6 = sshll.u32 %s673_s27, 4  ;;  %s585_s17 = scalar_lea.vmem %s354_s0, 128  ;;  %s845_s6 = int_to_ptr.vmem [resolvable:$true] %s365_s6 }
  0x61   :  { %v404_v18 = vld [vmem:[%s907_s7] ss:$0 sm:$0xff]  ;;  %p586_p12 = scmp.ne.s32.totalorder %s354_s0, %s585_s17  ;;  %p590_p13 = scmp.lt.s32.totalorder %s354_s0, %s354_s0 }
  0x62   :  { %434 = vmatpush3.bf16.msra.mxu0 %v470_v2  ;;  %442 = vmatpush3.bf16.msra.mxu1 %v473_v8  ;;  %v410_v33 = vld [vmem:[%s908_s8] ss:$0 sm:$0xff]  ;;  %p591_p0 = scmp.lt.s32.totalorder %s585_s17, %s585_s17 }
  0x63   :  { %447 = vmatprep.subr.bf16.mxu0 %v670_v0 }
  0x64   :  { %p592_p1 = por %p591_p0, %p590_p13 }
  0x65   :  { %436 = vmatmul.mubr.msk.bf16.vlgmr.msra.gmra.mrb[0].mxu0 %vm132_vm1, %v108_v7  ;;  %444 = vmatmul.mubr.msk.bf16.vlgmr.msra.gmra.mrb[0].mxu1 %vm132_vm1, %v190_v11 }
  0x66   :  { %448 = vmatpush3.bf16.msra.mxu0 %v472_v6  ;;  %451 = vmatprep.mubr.msk.bf16.mxu0 %vm671_vm0, %v670_v0  ;;  %p593_p2 = pnand %p592_p1, %p586_p12 }
  0x67   :  { %449 = vmatprep.subr.bf16.mxu0 %v670_v0 }
  0x6a   :  { %450 = vmatpush3.bf16.msra.mxu0 %v474_v12 }
  0x6d   :  { %452 = vmatmul.mubr.msk.bf16.vlgmr.msra.gmra.mrb[4].mxu0 %vm132_vm1, %v270_v15 }
 0x138   :  { %v170_v17 = vpop.f32.mrb[0].mxu0  ;;  %v251_v22 = vpop.f32.mrb[0].mxu1 }
 0x139   :  { %v171_v19 = vadd.f32 %v398_v16, %v170_v17  ;;  %v437_v20 = vpop.f32.mrb[1].mxu0  ;;  %v252_v26 = vadd.f32 %v404_v18, %v251_v22  ;;  %v445_v27 = vpop.f32.mrb[1].mxu1 }
 0x13a   :  { %v173_v21 = vpop.f32.mrb[2].mxu0  ;;  %v254_v28 = vpop.f32.mrb[2].mxu1 }
 0x13b   :  { %v416_v23 = vpack.c.bf16 %v171_v19, %v171_v19  ;;  %v174_v24 = vadd.f32 %v398_v16, %v173_v21  ;;  %v438_v25 = vpop.f32.mrb[3].mxu0  ;;  %v418_v30 = vpack.c.bf16 %v252_v26, %v252_v26  ;;  %v255_v31 = vadd.f32 %v404_v18, %v254_v28  ;;  %v446_v32 = vpop.f32.mrb[3].mxu1 }
 0x13d   :  { %v417_v29 = vpack.c.bf16 %v174_v24, %v174_v24  ;;  %186 = vst.msk [vmem:[#allocation11] sm:$0xf] %vm185_vm2, %v416_v23  ;;  %v419_v34 = vpack.c.bf16 %v255_v31, %v255_v31  ;;  %266 = vst.msk [vmem:[#allocation12] sm:$0xf] %vm185_vm2, %v418_v30 }
 0x13f   :  { %187 = vst.msk [vmem:[#allocation11 + $0x4] sm:$0xf] %vm185_vm2, %v417_v29 }
 0x140   :  { %v331_v35 = vpop.f32.mrb[4].mxu0 }
 0x141   :  { %596 = shalt.err (!%p593_p2)
}
 0x142   :  { %s597_s3 = scalar_lea.hbm %s909_s9, 128 }
 0x143   :  { %p598_p3 = scmp.ne.s32.totalorder %s909_s9, %s597_s3  ;;  %p601_p4 = scmp.lt.u32.totalorder %s597_s3, %s909_s9 }
 0x145   :  { %p603_p5 = pnand %p601_p4, %p598_p3 }
 0x147   :  { %606 = shalt.err (!%p603_p5)
}
 0x148   :  { %359 = dma.vmem_to_hbm [thread:$0]  %s354_s0, 128, %s909_s9, [#allocation4], %s665_s1, %s665_s1, %s666_s18   ;;  %v332_v36 = vadd.f32 %v410_v33, %v331_v35  ;;  %267 = vst.msk [vmem:[#allocation12 + $0x4] sm:$0xf] %vm185_vm2, %v419_v34  ;;  %v453_v37 = vpop.f32.mrb[5].mxu0 }
 0x149   :  { %s674_s2 = smov [#allocation14]   ;;  %v334_v38 = vpop.f32.mrb[6].mxu0  ;;  %s607_s4 = scalar_lea.vmem %s845_s6, 128 }
 0x14a   :  { %s377_s29 = sshll.u32 %s674_s2, 4  ;;  %p608_p6 = scmp.ne.s32.totalorder %s845_s6, %s607_s4  ;;  %s378_s29 = int_to_ptr.vmem [resolvable:$true] %s377_s29 }
 0x14b   :  { %p612_p7 = scmp.lt.s32.totalorder %s845_s6, %s845_s6  ;;  %p613_p8 = scmp.lt.s32.totalorder %s607_s4, %s607_s4 }
 0x14d   :  { %p614_p9 = por %p613_p8, %p612_p7 }
 0x14f   :  { %p615_p10 = pnand %p614_p9, %p608_p6 }
 0x151   :  { %618 = shalt.err (!%p615_p10)
}
 0x152   :  { %s619_s26 = scalar_lea.hbm %s910_s10, 128 }
 0x153   :  { %p620_p11 = scmp.ne.s32.totalorder %s910_s10, %s619_s26  ;;  %p623_p12 = scmp.lt.u32.totalorder %s619_s26, %s910_s10 }
 0x155   :  { %p625_p13 = pnand %p623_p12, %p620_p11 }
 0x157   :  { %628 = shalt.err (!%p625_p13)
}
 0x158   :  { %371 = dma.vmem_to_hbm [thread:$0]  %s845_s6, 128, %s910_s10, [#allocation13], %s665_s1, %s665_s1, %s666_s18   ;;  %v420_v39 = vpack.c.bf16 %v332_v36, %v332_v36  ;;  %v335_v40 = vadd.f32 %v410_v33, %v334_v38  ;;  %v454_v41 = vpop.f32.mrb[7].mxu0 }
 0x159   :  { %s629_s0 = scalar_lea.vmem %s378_s29, 128  ;;  %p634_p1 = scmp.lt.s32.totalorder %s378_s29, %s378_s29 }
 0x15a   :  { %346 = vst.msk [vmem:[#allocation14] sm:$0xf] %vm185_vm2, %v420_v39  ;;  %v421_v42 = vpack.c.bf16 %v335_v40, %v335_v40  ;;  %p630_p0 = scmp.ne.s32.totalorder %s378_s29, %s629_s0  ;;  %p635_p2 = scmp.lt.s32.totalorder %s629_s0, %s629_s0 }
 0x15c   :  { %347 = vst.msk [vmem:[#allocation14 + $0x4] sm:$0xf] %vm185_vm2, %v421_v42  ;;  %p636_p3 = por %p635_p2, %p634_p1 }
 0x15e   :  { %p637_p4 = pnand %p636_p3, %p630_p0 }
 0x160   :  { %640 = shalt.err (!%p637_p4)
}
 0x161   :  { %s641_s10 = scalar_lea.hbm %s911_s11, 128 }
 0x162   :  { %p642_p5 = scmp.ne.s32.totalorder %s911_s11, %s641_s10  ;;  %p645_p6 = scmp.lt.u32.totalorder %s641_s10, %s911_s11 }
 0x164   :  { %p647_p7 = pnand %p645_p6, %p642_p5 }
 0x166   :  { %650 = shalt.err (!%p647_p7)
}
 0x167   :  { %383 = dma.vmem_to_hbm [thread:$0]  %s378_s29, 128, %s911_s11, [#allocation13], %s665_s1, %s665_s1, %s666_s18  }
 0x168   :  { %657 = dma.done.wait [#allocation4], 128  }
 0x169   :  { %658 = vsyncadd [#allocation4], 4294967168 }
 0x16a   :  { %659 = dma.done.wait [#allocation13], 256  }
 0x16b   :  { %660 = vsyncadd [#allocation13], 4294967040 }
 0x16c   :  { %393 = vsyncpa [#allocation3], 1 }
 0x16d   :  { %394 = vsyncpa [#allocation6], 1 }
 0x16e   :  { %395 = vsyncpa [#allocation9], 1 }
 0x16f   :  { %396 = vsyncpa [#allocation4], 1 }
 0x170   :  { %397 = vsyncpa [#allocation13], 1 }

</bundles_post_ra>
